<compile_context>
chip_gen: v7x
topology: tpu7x:2x2x1
jax: 0.10.0
libtpu: 0.0.40
codegen_flags: <defaults>
</compile_context>

<pallas_src>
import functools

import jax
import jax.numpy as jnp
from jax.experimental import pallas as pl
from jax.experimental.pallas import tpu as pltpu

_N_TILE_CANDIDATES = (8192, 4096, 2048, 1024, 512)
_B_TILE_CANDIDATES = (512, 256, 128, 64, 32, 16, 8)
_DEFAULT_MAX_TILE_BYTES = 8 * 1024 * 1024  # per logits buffer (double-buffered)


def _round_up(x: int, m: int) -> int:
    return ((x + m - 1) // m) * m


def _choose_tiling(blocks: int, n: int, itemsize: int, max_tile_bytes: int):
    """Returns (pad_blocks, tile_b, n_pad, tile_n)."""
    # Sub-32-bit dtypes pack rows along sublanes: keep tile_b a multiple of the
    # packing factor so vregs stay fully packed (no masked half-vregs).
    b_mult = {4: 8, 2: 16, 1: 32}.get(itemsize, 8)
    pad_blocks = _round_up(blocks, b_mult)

    b_cands = [
        c for c in _B_TILE_CANDIDATES
        if c % b_mult == 0 and c <= pad_blocks and pad_blocks % c == 0
    ]
    # Prefer >= 2 b-tiles so the "parallel" axis feeds both v7x TensorCores.
    tile_b = next((c for c in b_cands if pad_blocks // c >= 2), b_cands[0])

    if tile_b * n * itemsize <= max_tile_bytes:
        # Whole N fits in one comfortably-sized step (full-dim last block is
        # legal for any N); no N padding and no N loop needed.
        return pad_blocks, tile_b, n, n

    # Stream N in lane-aligned chunks; zero-pad N (sum-neutral) so every tile
    # is a clean multiple of 512 lanes and the pipeline stays shape-uniform.
    n_pad = _round_up(n, 512)
    tile_n = next(
        (c for c in _N_TILE_CANDIDATES
         if n_pad % c == 0 and tile_b * c * itemsize <= max_tile_bytes),
        512,
    )
    return pad_blocks, tile_b, n_pad, tile_n


def _cost_loss_kernel(logits_ref, target_ref, partial_ref, acc_ref):
    n_idx = pl.program_id(1)

    @pl.when(n_idx == 0)
    def _init():
        acc_ref[...] = jnp.zeros_like(acc_ref)

    # Fold the N reduction into the step: per-row f32 partial sums (tile_b, 1).
    # Keeps the resident accumulator tiny (no full-tile f32 RMW traffic); the
    # in-vreg lane reduce uses the otherwise-idle XLU slot.
    acc_ref[...] += jnp.sum(
        logits_ref[...].astype(jnp.float32), axis=1, keepdims=True
    )

    @pl.when(n_idx == pl.num_programs(1) - 1)
    def _finalize():
        diff = acc_ref[...] - target_ref[...]          # (tile_b, 1) f32
        partial_ref[0, 0] = jnp.sum(diff * diff)       # scalar partial -> SMEM


@functools.partial(jax.jit, static_argnames=("max_tile_bytes",))
def cost_loss(logits: jax.Array, target: jax.Array,
              *, max_tile_bytes: int = _DEFAULT_MAX_TILE_BYTES) -> jax.Array:
    """logits: [blocks, N] (any float dtype); target: [blocks]. Returns scalar f32."""
    blocks, n = logits.shape
    assert target.shape == (blocks,)
    itemsize = jnp.dtype(logits.dtype).itemsize

    pad_blocks, tile_b, n_pad, tile_n = _choose_tiling(
        blocks, n, itemsize, max_tile_bytes
    )
    nb = pad_blocks // tile_b
    nn = n_pad // tile_n

    target2d = target.astype(jnp.float32).reshape(blocks, 1)
    if pad_blocks != blocks or n_pad != n:
        # Zero-padding is sum-neutral: padded rows have row_sum == 0 and a
        # padded target of 0, so their squared error contributes exactly 0.
        logits = jnp.pad(logits, ((0, pad_blocks - blocks), (0, n_pad - n)))
        target2d = jnp.pad(target2d, ((0, pad_blocks - blocks), (0, 0)))

    cost = pl.CostEstimate(
        flops=2 * pad_blocks * n_pad + 4 * pad_blocks,
        transcendentals=0,
        bytes_accessed=pad_blocks * n_pad * itemsize + pad_blocks * 4 + nb * 4,
    )

    partials = pl.pallas_call(
        _cost_loss_kernel,
        out_shape=jax.ShapeDtypeStruct((nb, 1), jnp.float32),
        grid_spec=pltpu.PrefetchScalarGridSpec(
            num_scalar_prefetch=0,
            grid=(nb, nn),  # reduction axis (N) last
            in_specs=[
                pl.BlockSpec((tile_b, tile_n), lambda b, k: (b, k)),
                pl.BlockSpec((tile_b, 1), lambda b, k: (b, 0)),
            ],
            out_specs=pl.BlockSpec(
                (1, 1), lambda b, k: (b, 0), memory_space=pltpu.SMEM
            ),
            scratch_shapes=[pltpu.VMEM((tile_b, 1), jnp.float32)],
        ),
        compiler_params=pltpu.CompilerParams(
            dimension_semantics=("parallel", "arbitrary"),
            vmem_limit_bytes=48 * 1024 * 1024,  # fits v7x (64 MiB) and v5e/v6e
        ),
        cost_estimate=cost,
    )(logits, target2d)  # logits streamed in native dtype (no HBM f32 copy)

    # Mean over the TRUE number of blocks (padding contributes 0 to the sum).
    return jnp.sum(partials) / jnp.float32(blocks)


if __name__ == "__main__":
    # --- Test 1: small f32, single N step (mirrors CostLoss(blocks, target)). ---
    blocks, features, target_value = 8, 16, 0.5
    logits = jax.random.normal(jax.random.PRNGKey(0), (blocks, features),
                               dtype=jnp.float32)
    target = jnp.ones((blocks,), dtype=jnp.float32) * target_value

    loss = jax.block_until_ready(cost_loss(logits, target))
    ref = jnp.mean((jnp.sum(logits, axis=1) - target) ** 2)
    assert jnp.allclose(loss, ref, rtol=1e-5, atol=1e-5), (loss, ref)

    # --- Test 2: bf16, non-divisible shapes, multi-step N + padded rows/cols.
    # A tiny max_tile_bytes forces the streamed (tile_b=16, tile_n=512) path. ---
    blocks2, features2 = 20, 1000
    logits2 = jax.random.normal(jax.random.PRNGKey(0), (blocks2, features2),
                                dtype=jnp.float32).astype(jnp.bfloat16)
    target2 = jnp.ones((blocks2,), dtype=jnp.float32) * 1.5

    loss2 = jax.block_until_ready(
        cost_loss(logits2, target2, max_tile_bytes=16 * 1024)
    )
    ref2 = jnp.mean(
        (jnp.sum(logits2.astype(jnp.float32), axis=1) - target2) ** 2
    )
    assert jnp.allclose(loss2, ref2, rtol=1e-3, atol=1e-3), (loss2, ref2)

    # --- Test 3: f32 with non-multiple-of-8 blocks (padded-row sum-neutrality,
    # nb = 2 partials path). ---
    blocks3, features3 = 10, 128
    logits3 = jax.random.normal(jax.random.PRNGKey(0), (blocks3, features3),
                                dtype=jnp.float32)
    target3 = jnp.ones((blocks3,), dtype=jnp.float32) * -0.25

    loss3 = jax.block_until_ready(cost_loss(logits3, target3))
    ref3 = jnp.mean((jnp.sum(logits3, axis=1) - target3) ** 2)
    assert jnp.allclose(loss3, ref3, rtol=1e-5, atol=1e-5), (loss3, ref3)

    print("KERNEL_OK")
</pallas_src>

<mosaic_0001>
module attributes {stable_mosaic.version = 11 : i64} {
  func.func @_cost_loss_kernel(%arg0: i32, %arg1: i32, %arg2: memref<8x16xf32, #tpu.memory_space<vmem>>, %arg3: memref<8x1xf32, #tpu.memory_space<vmem>>, %arg4: memref<1x1xf32, #tpu.memory_space<smem>>, %arg5: memref<8x1xf32, #tpu.memory_space<vmem>>) attributes {dimension_semantics = [#tpu.dimension_semantics<parallel>, #tpu.dimension_semantics<arbitrary>], iteration_bounds = array<i64: 1, 1>, scalar_prefetch = 0 : i64, scratch_operands = 1 : i64, tpu.core_type = #tpu.core_type<tc>, window_params = [{transform_indices = @transform_0, window_bounds = array<i64: 8, 16>}, {transform_indices = @transform_1, window_bounds = array<i64: 8, 1>}, {transform_indices = @transform_2, window_bounds = array<i64: 1, 1>}]} {
    %c0_i32 = arith.constant 0 : i32
    %0 = arith.cmpi eq, %arg1, %c0_i32 : i32
    %1 = arith.extui %0 : i1 to i32
    %c0_i32_0 = arith.constant 0 : i32
    %2 = arith.cmpi ne, %1, %c0_i32_0 : i32
    scf.if %2 {
      %cst_8 = arith.constant 0.000000e+00 : f32
      %12 = vector.broadcast %cst_8 : f32 to vector<8x1xf32>
      %c0_9 = arith.constant 0 : index
      %c0_10 = arith.constant 0 : index
      %13 = vector.load %arg5[%c0_9, %c0_10] : memref<8x1xf32, #tpu.memory_space<vmem>>, vector<8x1xf32>
      tpu.vector_store %arg5[%c0_9, %c0_10], %12 {strides = array<i32>} : memref<8x1xf32, #tpu.memory_space<vmem>>, vector<8x1xf32>,
    } else {
    }
    %c0 = arith.constant 0 : index
    %c0_1 = arith.constant 0 : index
    %3 = vector.load %arg5[%c0, %c0_1] : memref<8x1xf32, #tpu.memory_space<vmem>>, vector<8x1xf32>
    %c0_2 = arith.constant 0 : index
    %c0_3 = arith.constant 0 : index
    %4 = vector.load %arg2[%c0_2, %c0_3] : memref<8x16xf32, #tpu.memory_space<vmem>>, vector<8x16xf32>
    %cst = arith.constant dense<0.000000e+00> : vector<8xf32>
    %5 = vector.multi_reduction <add>, %4, %cst [1] : vector<8x16xf32> to vector<8xf32>
    %6 = vector.shape_cast %5 : vector<8xf32> to vector<8x1xf32>
    %7 = arith.addf %3, %6 : vector<8x1xf32>
    %c0_4 = arith.constant 0 : index
    %c0_5 = arith.constant 0 : index
    %8 = vector.load %arg5[%c0_4, %c0_5] : memref<8x1xf32, #tpu.memory_space<vmem>>, vector<8x1xf32>
    tpu.vector_store %arg5[%c0_4, %c0_5], %7 {strides = array<i32>} : memref<8x1xf32, #tpu.memory_space<vmem>>, vector<8x1xf32>,
    %c0_i32_6 = arith.constant 0 : i32
    %9 = arith.cmpi eq, %arg1, %c0_i32_6 : i32
    %10 = arith.extui %9 : i1 to i32
    %c0_i32_7 = arith.constant 0 : i32
    %11 = arith.cmpi ne, %10, %c0_i32_7 : i32
    scf.if %11 {
      %c0_8 = arith.constant 0 : index
      %c0_9 = arith.constant 0 : index
      %12 = vector.load %arg5[%c0_8, %c0_9] : memref<8x1xf32, #tpu.memory_space<vmem>>, vector<8x1xf32>
      %c0_10 = arith.constant 0 : index
      %c0_11 = arith.constant 0 : index
      %13 = vector.load %arg3[%c0_10, %c0_11] : memref<8x1xf32, #tpu.memory_space<vmem>>, vector<8x1xf32>
      %14 = arith.subf %12, %13 : vector<8x1xf32>
      %15 = arith.mulf %14, %14 : vector<8x1xf32>
      %16 = vector.shape_cast %15 : vector<8x1xf32> to vector<1x8x1xf32>
      %cst_12 = arith.constant dense<0.000000e+00> : vector<1xf32>
      %17 = vector.multi_reduction <add>, %16, %cst_12 [1, 2] : vector<1x8x1xf32> to vector<1xf32>
      %18 = vector.shape_cast %17 : vector<1xf32> to vector<1x1x1xf32>
      %19 = vector.extract %18[0, 0, 0] : f32 from vector<1x1x1xf32>
      %c0_13 = arith.constant 0 : index
      %c0_14 = arith.constant 0 : index
      %20 = memref.load %arg4[%c0_13, %c0_14] : memref<1x1xf32, #tpu.memory_space<smem>>
      memref.store %19, %arg4[%c0_13, %c0_14] : memref<1x1xf32, #tpu.memory_space<smem>>
    } else {
    }
    return
  }
  func.func @transform_0(%arg0: i32, %arg1: i32) -> (i32, i32) {
    %c0_i32 = arith.constant 0 : i32
    return %arg0, %arg1 : i32, i32
  }
  func.func @transform_1(%arg0: i32, %arg1: i32) -> (i32, i32) {
    %c0_i32 = arith.constant 0 : i32
    %c0_i32_0 = arith.constant 0 : i32
    return %arg0, %c0_i32 : i32, i32
  }
  func.func @transform_2(%arg0: i32, %arg1: i32) -> (i32, i32) {
    %c0_i32 = arith.constant 0 : i32
    %c0_i32_0 = arith.constant 0 : i32
    return %arg0, %c0_i32 : i32, i32
  }
}

</mosaic_0001>

<bundles_post_ra>
// kernel: cost_loss.1
= control target key start
LH: loop header
LB: loop body
LE: loop exit
PB: predicated region body
PF: predicated region fallthrough
CT: control target
= control target key end

     0   :  { %vm20_vm0 = vcmask 130048   ;;  %s110_s0 = inlined_call_operand.vmem [shape: f32[8,16], index: 0, kind: input, shape index: {}]   ;;  %s111_s1 = inlined_call_operand.vmem [shape: f32[8,1], index: 1, kind: input, shape index: {}]   ;;  %s112_s2 = inlined_call_operand.hbm [shape: f32[1,1], index: 2, kind: output, shape index: {}]  }
   0x1   :  { %v19_v0 = vld [vmem:[%s110_s0] sm:$0xff] }
   0x2   :  { %7 = vsyncpa [#allocation4], 0  ;;  %v21_v1 = vsel %vm20_vm0, %v19_v0, 0.0  ;;  %vm16_vm1 = vcmask 7168   ;;  %v75_v2 = vmov 0.0   ;;  %v31_v6 = vld [vmem:[%s111_s1] sm:$0xff] }
   0x3   :  { %22 = vadd.xlane.f32.xlu0 %v21_v1  ;;  %17 = vst.msk [vmem:[#allocation2] sm:$0xff] %vm16_vm1, %v75_v2  ;;  %s63_s15 = scalar_lea.hbm %s112_s2, 16 }
   0x4   :  { %p64_p0 = scmp.ne.s32.totalorder %s112_s2, %s63_s15  ;;  %p67_p1 = scmp.lt.u32.totalorder %s63_s15, %s112_s2 }
   0x6   :  { %p69_p2 = pnand %p67_p1, %p64_p0 }
   0xa   :  { %v18_v3 = vld [vmem:[#allocation2] sm:$0xff] }
  0x90   :  { %v23_v4 = vpop.xlane.xlu0 %22 }
  0x91   :  { %v24_v5 = vadd.f32 %v23_v4, %v18_v3 }
  0x93   :  { %26 = vst.msk [vmem:[#allocation2] sm:$0xff] %vm16_vm1, %v24_v5 }
  0x9a   :  { %v30_v7 = vld [vmem:[#allocation2] sm:$0xff] }
  0x9b   :  { %v32_v8 = vsub.f32 %v30_v7, %v31_v6 }
  0x9d   :  { %v33_v9 = vmul.f32 %v32_v8, %v32_v8 }
  0x9f   :  { %v34_v10 = vsel %vm16_vm1, %v33_v9, 0.0 }
  0xa0   :  { %35 = vadd.xlane.f32.xlu0 %v34_v10 }
 0x12d   :  { %v36_v11 = vpop.xlane.xlu0 %35 }
 0x12e   :  { %v37_v12 = vrot.slane %v36_v11, 4 }
 0x130   :  { %v38_v13 = vadd.f32 %v37_v12, %v36_v11 }
 0x132   :  { %v39_v14 = vrot.slane %v38_v13, 2 }
 0x134   :  { %v40_v15 = vadd.f32 %v39_v14, %v38_v13 }
 0x136   :  { %v41_v16 = vrot.slane %v40_v15, 1 }
 0x138   :  { %v42_v17 = vadd.f32 %v41_v16, %v40_v15 }
 0x13a   :  { %59 = vpush %v42_v17 }
 0x16b   :  { %s60_s0 = spop %59 }
 0x16c   :  { %45 = sst [smem:[#allocation3]] %s60_s0 }
 0x16d   :  { %72 = shalt.err (!%p69_p2)
}
 0x16e   :  { %s76_s19 = smov [#allocation3]  }
 0x16f   :  { %53 = dma.smem_to_hbm %s76_s19, 16, %s112_s2, [#allocation4]  }
 0x170   :  { %73 = dma.done.wait [#allocation4], 16  }
 0x171   :  { %74 = vsyncadd [#allocation4], 4294967280 }
 0x172   :  { %57 = sfence }
 0x173   :  { %58 = vsyncpa [#allocation4], 1 }

</bundles_post_ra>
